<compile_context>
chip_gen: v6e
topology: v6e:2x2x1
jax: 0.10.0
libtpu: 0.0.40
codegen_flags: <defaults>
</compile_context>

<pallas_src>
import functools
import math

import jax
import jax.numpy as jnp
from jax.experimental import pallas as pl
from jax.experimental.pallas import tpu as pltpu

EPS = 1e-5  # nn.BatchNorm2d default eps


def _round_up(a, b):
    return (a + b - 1) // b * b


@functools.lru_cache(maxsize=1)
def _vmem_budget_bytes():
    """Per-generation scoped-VMEM budget: ~60% of physical VMEM
    (v5e/v6e 128 MiB -> ~76 MiB, v7x 64 MiB -> ~38 MiB); conservative
    fallback if the query is unavailable."""
    cap = 64 * 1024 * 1024
    try:
        info = pltpu.get_tpu_info()
        cap = int(getattr(info, "vmem_capacity_bytes", cap))
    except Exception:
        pass
    return max(16 * 1024 * 1024, min(int(cap * 0.6), 96 * 1024 * 1024))


def _pick_block_m(m, max_rows):
    """Largest multiple-of-8 divisor of m within the VMEM-derived row cap,
    preferring >=2 grid steps so the "parallel" grid axis shards across
    TensorCores (v7x megacore) and the BlockSpec pipeline has work to overlap."""
    cap = min(max_rows, m)
    if m >= 16:
        cap = min(cap, max(8, m // 2))
    best, d = 0, 8
    while d <= cap:
        if m % d == 0:
            best = d
        d += 8
    return best if best > 0 else m


def _weight_block_spec(k, cout_p):
    # Constant block index -> single-buffer the (tiny) weight tile.
    try:
        return pl.BlockSpec((k, cout_p), lambda i: (0, 0),
                            pipeline_mode=pl.Buffered(1))
    except (TypeError, AttributeError):
        return pl.BlockSpec((k, cout_p), lambda i: (0, 0))


def _conv_stats_kernel(x_ref, w_ref, conv_ref, stats_ref):
    """One grid step: (block_m, 9*Cin) bf16 @ (9*Cin, Cout_p) bf16 -> f32 acc;
    bf16 store of the conv block + f32 per-block [sum, sum_sq] BN partials
    (written as an 8-sublane tile for unmasked stores)."""
    acc = jnp.dot(x_ref[...], w_ref[...], preferred_element_type=jnp.float32)
    conv_ref[...] = acc.astype(conv_ref.dtype)
    s = jnp.sum(acc, axis=0, keepdims=True)           # (1, Cout_p), f32
    sq = jnp.sum(acc * acc, axis=0, keepdims=True)    # (1, Cout_p), f32
    rows = jax.lax.broadcasted_iota(jnp.int32, (8, acc.shape[1]), 0)
    stats_ref[0] = jnp.where(rows == 0, s, jnp.where(rows == 1, sq, 0.0))


def conv_bn_relu_nhwc(x, weight, gamma, beta):
    """ConvBatchNorm layer: 3x3 conv (pad=1, bias folded into BN mean) ->
    BatchNorm2d with training-batch statistics -> ReLU.  NHWC in, NHWC out."""
    n, h, w, cin = x.shape
    cout = weight.shape[0]
    k = 9 * cin                               # full 3x3 im2col contraction
    cout_p = _round_up(cout, 128)             # lane-dense MXU columns / stores
    m = n * h * w

    budget = _vmem_budget_bytes()
    # resident bytes per output row per step: double-buffered bf16 in/out
    # blocks + f32 dot result / squared intermediate.
    per_row = 4 * k + 12 * cout_p
    max_rows = max(8, min(8192, budget // (2 * per_row)))
    max_rows -= max_rows % 8
    block_m = _pick_block_m(m, max_rows)
    nblk = m // block_m

    # ---- host-side prep (single XLA fusion under jit): pad + 9-tap im2col,
    # streamed bf16.  Ordering of taps matches the weight reshape below.
    xb = x.astype(jnp.bfloat16)
    xp = jnp.pad(xb, ((0, 0), (1, 1), (1, 1), (0, 0)))
    cols = [xp[:, kh:kh + h, kw:kw + w, :]
            for kh in range(3) for kw in range(3)]
    xcol = jnp.concatenate(cols, axis=-1).reshape(m, k)

    # (Cout, Cin, kh, kw) -> (9*Cin, Cout_p), bf16 for the native MXU path.
    wmat = jnp.transpose(weight, (2, 3, 1, 0)).reshape(k, cout)
    wmat = jnp.pad(wmat, ((0, 0), (0, cout_p - cout))).astype(jnp.bfloat16)

    conv, stats = pl.pallas_call(
        _conv_stats_kernel,
        out_shape=(jax.ShapeDtypeStruct((m, cout_p), jnp.bfloat16),
                   jax.ShapeDtypeStruct((nblk, 8, cout_p), jnp.float32)),
        grid=(nblk,),
        in_specs=[pl.BlockSpec((block_m, k), lambda i: (i, 0)),
                  _weight_block_spec(k, cout_p)],
        out_specs=(pl.BlockSpec((block_m, cout_p), lambda i: (i, 0)),
                   pl.BlockSpec((1, 8, cout_p), lambda i: (i, 0, 0))),
        compiler_params=pltpu.CompilerParams(
            dimension_semantics=("parallel",),
            vmem_limit_bytes=budget),
    )(xcol, wmat)

    # ---- tiny global BN reduction + fused affine + ReLU as plain jnp, so XLA
    # fuses it with the next layer's im2col prep (no standalone pass-2 kernel).
    sums = jnp.sum(stats[:, 0, :cout], axis=0)
    sumsq = jnp.sum(stats[:, 1, :cout], axis=0)
    mean = sums / m
    # NOTE: E[x^2]-E[x]^2 in f32; OK here since the conv bias is folded away
    # and activations are roughly zero-mean (see review's numerical note).
    var = jnp.maximum(sumsq / m - mean * mean, 0.0)   # biased var, as PyTorch
    scale = gamma.astype(jnp.float32) * jax.lax.rsqrt(var + EPS)
    shift = beta.astype(jnp.float32) - mean * scale
    y = conv[:, :cout].astype(jnp.float32) * scale[None, :] + shift[None, :]
    y = jnp.maximum(y, 0.0).astype(jnp.bfloat16)
    return y.reshape(n, h, w, cout)


def up_block(x, skip_x, params):
    """UpBlock.forward: nearest-upsample x by 2, concat with skip on channels,
    then nb_Conv ConvBatchNorm layers.  NCHW in, NCHW out (PyTorch layout)."""
    n, cx, h0, w0 = x.shape
    x_nhwc = jnp.transpose(x, (0, 2, 3, 1)).astype(jnp.bfloat16)
    s_nhwc = jnp.transpose(skip_x, (0, 2, 3, 1)).astype(jnp.bfloat16)
    # nearest-x2 upsample via broadcast+reshape; pure XLA glue that fuses into
    # the first layer's im2col prep under jit (no forced HBM materialization).
    up = jnp.broadcast_to(x_nhwc[:, :, None, :, None, :],
                          (n, h0, 2, w0, 2, cx)).reshape(n, 2 * h0, 2 * w0, cx)
    out = jnp.concatenate([up, s_nhwc], axis=-1)      # == torch.cat(dim=1)
    for (w, _bias, gamma, beta) in params:
        # conv bias is dropped: exactly cancelled by BN mean subtraction.
        out = conv_bn_relu_nhwc(out, w, gamma, beta)
    return jnp.transpose(out.astype(jnp.float32), (0, 3, 1, 2))


def reference_up_block(x, skip_x, params):
    """Pure-JAX f32 reference matching the PyTorch UpBlock forward."""
    up = jnp.repeat(jnp.repeat(x, 2, axis=2), 2, axis=3)
    h = jnp.concatenate([up, skip_x], axis=1)
    for (w, bias, gamma, beta) in params:
        h = jax.lax.conv_general_dilated(
            h, w, window_strides=(1, 1), padding=((1, 1), (1, 1)),
            dimension_numbers=("NCHW", "OIHW", "NCHW"))
        h = h + bias[None, :, None, None]
        mean = jnp.mean(h, axis=(0, 2, 3), keepdims=True)
        var = jnp.mean((h - mean) ** 2, axis=(0, 2, 3), keepdims=True)
        h = (h - mean) * jax.lax.rsqrt(var + EPS)
        h = h * gamma[None, :, None, None] + beta[None, :, None, None]
        h = jnp.maximum(h, 0.0)
    return h


if __name__ == "__main__":
    key = jax.random.PRNGKey(0)
    keys = jax.random.split(key, 10)

    # x: (2, 4, 8, 8) -> upsampled to 16x16; skip_x: (2, 4, 16, 16)
    N, C_x, C_skip, H0, W0 = 2, 4, 4, 8, 8
    C_out, nb_conv = 4, 2
    C_in = C_x + C_skip

    x = jax.random.normal(keys[0], (N, C_x, H0, W0), dtype=jnp.float32)
    skip = jax.random.normal(keys[1], (N, C_skip, 2 * H0, 2 * W0),
                             dtype=jnp.float32)

    params = []
    cin, ki = C_in, 2
    for _ in range(nb_conv):
        bound = 1.0 / math.sqrt(cin * 9)
        w = jax.random.uniform(keys[ki], (C_out, cin, 3, 3), jnp.float32,
                               -bound, bound)
        bias = jax.random.uniform(keys[ki + 1], (C_out,), jnp.float32,
                                  -bound, bound)
        gamma = jax.random.uniform(keys[ki + 2], (C_out,), jnp.float32,
                                   0.5, 1.5)
        beta = 0.1 * jax.random.normal(keys[ki + 3], (C_out,),
                                       dtype=jnp.float32)
        params.append((w, bias, gamma, beta))
        cin, ki = C_out, ki + 4

    out = jax.block_until_ready(jax.jit(up_block)(x, skip, params))
    ref = jax.block_until_ready(reference_up_block(x, skip, params))

    assert out.shape == (N, C_out, 2 * H0, 2 * W0), out.shape
    err_max = float(jnp.max(jnp.abs(out - ref)))
    err_mean = float(jnp.mean(jnp.abs(out - ref)))
    # Tolerances cover bf16 activation streaming + bf16 conv stores through
    # two conv+BN layers; MXU accumulation and all BN statistics are f32.
    assert err_max < 1.5e-1, err_max
    assert err_mean < 3.0e-2, err_mean
    print("KERNEL_OK")
</pallas_src>

<mosaic_0001>
module attributes {stable_mosaic.version = 11 : i64} {
  func.func @_conv_stats_kernel(%arg0: i32, %arg1: memref<256x72xbf16, #tpu.memory_space<vmem>>, %arg2: memref<72x128xbf16, #tpu.memory_space<vmem>>, %arg3: memref<256x128xbf16, #tpu.memory_space<vmem>>, %arg4: memref<1x8x128xf32, #tpu.memory_space<vmem>>) attributes {dimension_semantics = [#tpu.dimension_semantics<parallel>], iteration_bounds = array<i64: 2>, scalar_prefetch = 0 : i64, scratch_operands = 0 : i64, tpu.core_type = #tpu.core_type<tc>, window_params = [{transform_indices = @transform_0, window_bounds = array<i64: 256, 72>}, {pipeline_mode = #tpu.pipeline_mode<synchronous>, transform_indices = @transform_1, window_bounds = array<i64: 72, 128>}, {transform_indices = @transform_2, window_bounds = array<i64: 256, 128>}, {transform_indices = @transform_3, window_bounds = array<i64: 1, 8, 128>}]} {
    %c0 = arith.constant 0 : index
    %c0_0 = arith.constant 0 : index
    %0 = vector.load %arg1[%c0, %c0_0] : memref<256x72xbf16, #tpu.memory_space<vmem>>, vector<256x72xbf16>
    %c0_1 = arith.constant 0 : index
    %c0_2 = arith.constant 0 : index
    %1 = vector.load %arg2[%c0_1, %c0_2] : memref<72x128xbf16, #tpu.memory_space<vmem>>, vector<72x128xbf16>
    %cst = arith.constant dense<0.000000e+00> : vector<256x128xf32>
    %2 = tpu.matmul %0, %1, %cst {dimension_numbers = #tpu.dot_dimension_numbers<[1], [0], [0], [1], [0, 0, 1, 1], [], []>} : vector<256x72xbf16>, vector<72x128xbf16>, vector<256x128xf32> -> vector<256x128xf32>
    %3 = arith.truncf %2 : vector<256x128xf32> to vector<256x128xbf16>
    %c0_3 = arith.constant 0 : index
    %c0_4 = arith.constant 0 : index
    %4 = vector.load %arg3[%c0_3, %c0_4] : memref<256x128xbf16, #tpu.memory_space<vmem>>, vector<256x128xbf16>
    tpu.vector_store %arg3[%c0_3, %c0_4], %3 {strides = array<i32>} : memref<256x128xbf16, #tpu.memory_space<vmem>>, vector<256x128xbf16>,
    %cst_5 = arith.constant dense<0.000000e+00> : vector<128xf32>
    %5 = vector.multi_reduction <add>, %2, %cst_5 [0] : vector<256x128xf32> to vector<128xf32>
    %6 = vector.shape_cast %5 : vector<128xf32> to vector<1x128xf32>
    %7 = arith.mulf %2, %2 : vector<256x128xf32>
    %cst_6 = arith.constant dense<0.000000e+00> : vector<128xf32>
    %8 = vector.multi_reduction <add>, %7, %cst_6 [0] : vector<256x128xf32> to vector<128xf32>
    %9 = vector.shape_cast %8 : vector<128xf32> to vector<1x128xf32>
    %10 = tpu.iota {dimensions = array<i32: 0>} : vector<8x128xi32>
    %c0_i32 = arith.constant 0 : i32
    %11 = vector.broadcast %c0_i32 : i32 to vector<8x128xi32>
    %12 = arith.cmpi eq, %10, %11 : vector<8x128xi32>
    %c1_i32 = arith.constant 1 : i32
    %13 = vector.broadcast %c1_i32 : i32 to vector<8x128xi32>
    %14 = arith.cmpi eq, %10, %13 : vector<8x128xi32>
    %cst_7 = arith.constant 0.000000e+00 : f32
    %15 = vector.shape_cast %9 : vector<1x128xf32> to vector<1x128xf32>
    %16 = vector.broadcast %15 : vector<1x128xf32> to vector<8x128xf32>
    %17 = vector.broadcast %cst_7 : f32 to vector<8x128xf32>
    %18 = arith.select %14, %16, %17 : vector<8x128xi1>, vector<8x128xf32>
    %19 = vector.shape_cast %6 : vector<1x128xf32> to vector<1x128xf32>
    %20 = vector.broadcast %19 : vector<1x128xf32> to vector<8x128xf32>
    %21 = arith.select %12, %20, %18 : vector<8x128xi1>, vector<8x128xf32>
    %c0_8 = arith.constant 0 : index
    %c0_9 = arith.constant 0 : index
    %c0_10 = arith.constant 0 : index
    %22 = vector.load %arg4[%c0_8, %c0_9, %c0_10] : memref<1x8x128xf32, #tpu.memory_space<vmem>>, vector<1x8x128xf32>
    %23 = vector.shape_cast %22 : vector<1x8x128xf32> to vector<8x128xf32>
    %24 = vector.shape_cast %21 : vector<8x128xf32> to vector<1x8x128xf32>
    tpu.vector_store %arg4[%c0_8, %c0_9, %c0_10], %24 {strides = array<i32>} : memref<1x8x128xf32, #tpu.memory_space<vmem>>, vector<1x8x128xf32>,
    return
  }
  func.func @transform_0(%arg0: i32) -> (i32, i32) {
    %c0_i32 = arith.constant 0 : i32
    %c0_i32_0 = arith.constant 0 : i32
    return %arg0, %c0_i32 : i32, i32
  }
  func.func @transform_1(%arg0: i32) -> (i32, i32) {
    %c0_i32 = arith.constant 0 : i32
    %c0_i32_0 = arith.constant 0 : i32
    %c0_i32_1 = arith.constant 0 : i32
    return %c0_i32, %c0_i32_0 : i32, i32
  }
  func.func @transform_2(%arg0: i32) -> (i32, i32) {
    %c0_i32 = arith.constant 0 : i32
    %c0_i32_0 = arith.constant 0 : i32
    return %arg0, %c0_i32 : i32, i32
  }
  func.func @transform_3(%arg0: i32) -> (i32, i32, i32) {
    %c0_i32 = arith.constant 0 : i32
    %c0_i32_0 = arith.constant 0 : i32
    %c0_i32_1 = arith.constant 0 : i32
    return %arg0, %c0_i32, %c0_i32_0 : i32, i32, i32
  }
}

module attributes {stable_mosaic.version = 11 : i64} {
  func.func @_conv_stats_kernel(%arg0: i32, %arg1: memref<256x36xbf16, #tpu.memory_space<vmem>>, %arg2: memref<36x128xbf16, #tpu.memory_space<vmem>>, %arg3: memref<256x128xbf16, #tpu.memory_space<vmem>>, %arg4: memref<1x8x128xf32, #tpu.memory_space<vmem>>) attributes {dimension_semantics = [#tpu.dimension_semantics<parallel>], iteration_bounds = array<i64: 2>, scalar_prefetch = 0 : i64, scratch_operands = 0 : i64, tpu.core_type = #tpu.core_type<tc>, window_params = [{transform_indices = @transform_0, window_bounds = array<i64: 256, 36>}, {pipeline_mode = #tpu.pipeline_mode<synchronous>, transform_indices = @transform_1, window_bounds = array<i64: 36, 128>}, {transform_indices = @transform_2, window_bounds = array<i64: 256, 128>}, {transform_indices = @transform_3, window_bounds = array<i64: 1, 8, 128>}]} {
    %c0 = arith.constant 0 : index
    %c0_0 = arith.constant 0 : index
    %0 = vector.load %arg1[%c0, %c0_0] : memref<256x36xbf16, #tpu.memory_space<vmem>>, vector<256x36xbf16>
    %c0_1 = arith.constant 0 : index
    %c0_2 = arith.constant 0 : index
    %1 = vector.load %arg2[%c0_1, %c0_2] : memref<36x128xbf16, #tpu.memory_space<vmem>>, vector<36x128xbf16>
    %cst = arith.constant dense<0.000000e+00> : vector<256x128xf32>
    %2 = tpu.matmul %0, %1, %cst {dimension_numbers = #tpu.dot_dimension_numbers<[1], [0], [0], [1], [0, 0, 1, 1], [], []>} : vector<256x36xbf16>, vector<36x128xbf16>, vector<256x128xf32> -> vector<256x128xf32>
    %3 = arith.truncf %2 : vector<256x128xf32> to vector<256x128xbf16>
    %c0_3 = arith.constant 0 : index
    %c0_4 = arith.constant 0 : index
    %4 = vector.load %arg3[%c0_3, %c0_4] : memref<256x128xbf16, #tpu.memory_space<vmem>>, vector<256x128xbf16>
    tpu.vector_store %arg3[%c0_3, %c0_4], %3 {strides = array<i32>} : memref<256x128xbf16, #tpu.memory_space<vmem>>, vector<256x128xbf16>,
    %cst_5 = arith.constant dense<0.000000e+00> : vector<128xf32>
    %5 = vector.multi_reduction <add>, %2, %cst_5 [0] : vector<256x128xf32> to vector<128xf32>
    %6 = vector.shape_cast %5 : vector<128xf32> to vector<1x128xf32>
    %7 = arith.mulf %2, %2 : vector<256x128xf32>
    %cst_6 = arith.constant dense<0.000000e+00> : vector<128xf32>
    %8 = vector.multi_reduction <add>, %7, %cst_6 [0] : vector<256x128xf32> to vector<128xf32>
    %9 = vector.shape_cast %8 : vector<128xf32> to vector<1x128xf32>
    %10 = tpu.iota {dimensions = array<i32: 0>} : vector<8x128xi32>
    %c0_i32 = arith.constant 0 : i32
    %11 = vector.broadcast %c0_i32 : i32 to vector<8x128xi32>
    %12 = arith.cmpi eq, %10, %11 : vector<8x128xi32>
    %c1_i32 = arith.constant 1 : i32
    %13 = vector.broadcast %c1_i32 : i32 to vector<8x128xi32>
    %14 = arith.cmpi eq, %10, %13 : vector<8x128xi32>
    %cst_7 = arith.constant 0.000000e+00 : f32
    %15 = vector.shape_cast %9 : vector<1x128xf32> to vector<1x128xf32>
    %16 = vector.broadcast %15 : vector<1x128xf32> to vector<8x128xf32>
    %17 = vector.broadcast %cst_7 : f32 to vector<8x128xf32>
    %18 = arith.select %14, %16, %17 : vector<8x128xi1>, vector<8x128xf32>
    %19 = vector.shape_cast %6 : vector<1x128xf32> to vector<1x128xf32>
    %20 = vector.broadcast %19 : vector<1x128xf32> to vector<8x128xf32>
    %21 = arith.select %12, %20, %18 : vector<8x128xi1>, vector<8x128xf32>
    %c0_8 = arith.constant 0 : index
    %c0_9 = arith.constant 0 : index
    %c0_10 = arith.constant 0 : index
    %22 = vector.load %arg4[%c0_8, %c0_9, %c0_10] : memref<1x8x128xf32, #tpu.memory_space<vmem>>, vector<1x8x128xf32>
    %23 = vector.shape_cast %22 : vector<1x8x128xf32> to vector<8x128xf32>
    %24 = vector.shape_cast %21 : vector<8x128xf32> to vector<1x8x128xf32>
    tpu.vector_store %arg4[%c0_8, %c0_9, %c0_10], %24 {strides = array<i32>} : memref<1x8x128xf32, #tpu.memory_space<vmem>>, vector<1x8x128xf32>,
    return
  }
  func.func @transform_0(%arg0: i32) -> (i32, i32) {
    %c0_i32 = arith.constant 0 : i32
    %c0_i32_0 = arith.constant 0 : i32
    return %arg0, %c0_i32 : i32, i32
  }
  func.func @transform_1(%arg0: i32) -> (i32, i32) {
    %c0_i32 = arith.constant 0 : i32
    %c0_i32_0 = arith.constant 0 : i32
    %c0_i32_1 = arith.constant 0 : i32
    return %c0_i32, %c0_i32_0 : i32, i32
  }
  func.func @transform_2(%arg0: i32) -> (i32, i32) {
    %c0_i32 = arith.constant 0 : i32
    %c0_i32_0 = arith.constant 0 : i32
    return %arg0, %c0_i32 : i32, i32
  }
  func.func @transform_3(%arg0: i32) -> (i32, i32, i32) {
    %c0_i32 = arith.constant 0 : i32
    %c0_i32_0 = arith.constant 0 : i32
    %c0_i32_1 = arith.constant 0 : i32
    return %arg0, %c0_i32, %c0_i32_0 : i32, i32, i32
  }
}

</mosaic_0001>

<bundles_post_ra>
// kernel: up_block.2
= control target key start
LH: loop header
LB: loop body
LE: loop exit
PB: predicated region body
PF: predicated region fallthrough
CT: control target
= control target key end

     0   :  { %s1248_s12 = smov 0   ;;  %s1437_s0 = inlined_call_operand.vmem [shape: bf16[512,72], index: 0, kind: input, shape index: {}]   ;;  %s1438_s1 = inlined_call_operand.vmem [shape: bf16[72,128], index: 1, kind: input, shape index: {}]   ;;  %s1439_s2 = inlined_call_operand.vmem [shape: bf16[512,128], index: 2, kind: output, shape index: {0}]   ;;  %s1440_s3 = inlined_call_operand.vmem [shape: f32[2,8,128], index: 3, kind: output, shape index: {1}]  }
   0x1 LB: > { %s1254_s13 = sadd.s32 4294967295, %s1226_s12   ;;  %p912_p0 = scmp.ge.s32.totalorder %s1226_s12, 1  ;;  %s1226_s12 = sphi %s1248_s12, %s14_s12  }
   0x2   : > { %p141_p1 = scmp.lt.s32.totalorder %s1226_s12, 3 }
   0x4   : > { %p142_p2 = pnand %p912_p0, %p141_p1 }
   0x5   : > { %s913_s18 = sshll.u32 (!%p142_p2), %s1254_s13, 5  ;;  %p181_p4 = scmp.lt.s32.totalorder (!%p142_p2), %s1254_s13, 1 }
   0x6   : > { %145 = sbr.rel (%p142_p2) target bundleno = 310 (0x136), region = 28  ;;  %p170_p3 = scmp.lt.s32.totalorder (!%p142_p2), %s913_s18, 63 }
   0xb   : > { %v1199_v0 = vld [vmem:[%s1438_s1 + $0x20] ss:$0 sps:$4 sm:$0xff]   ;;  %vm383_vm0 = vcmask 1043456   ;;  %v1200_v1 = vld [vmem:[%s1438_s1 + $0x18] sm:$0xff]   ;;  %v1201_v3 = vld [vmem:[%s1438_s1 + $0x10] sm:$0xff]   ;;  %s1442_s18 = smov (!%p170_p3, %s913_s18), 63 }
   0xc   : > { %1189 = vmatprep.subr.msk.bf16.mxu0 %vm383_vm0, %v1199_v0  ;;  %v385_v2 = vsel %vm383_vm0, %v1199_v0, 0  ;;  %1190 = vmatprep.subr.msk.bf16.mxu1 %vm383_vm0, %v1199_v0  ;;  %v1202_v4 = vld [vmem:[%s1438_s1 + $0x8] sm:$0xff]   ;;  %s914_s23 = sshll.u32 %s1442_s18, 2  ;;  %vm334_vm1 = vcmask 588800   ;;  %v1203_v6 = vld [vmem:[%s1438_s1] sm:$0xff]   ;;  %s1444_s13 = smov (!%p181_p4, %s1254_s13), 1 }
   0xd   : > { %1138 = vmatpush3.bf16.msra.mxu0 %v385_v2  ;;  %1184 = vmatpush3.bf16.msra.mxu1 %v385_v2  ;;  %s1279_s26 = scalar_lea.vmem %s1437_s0, %s914_s23  ;;  %s1325_s4 = scalar_lea.vmem %s1439_s2, %s914_s23 }
   0xe   : > { %1139 = vmatprep.subr.bf16.mxu0 %v1200_v1  ;;  %1180 = vmatprep.subr.bf16.mxu1 %v1200_v1  ;;  %v1204_v5 = vld [vmem:[%s1279_s26] sm:$0xff]   ;;  %v1205_v7 = vld [vmem:[%s1279_s26 + $0x8] sm:$0xff]   ;;  %v1206_v8 = vld [vmem:[%s1279_s26 + $0x10] sm:$0xff]   ;;  %s917_s5 = sshll.u32 %s1444_s13, 3 }
   0xf   : > { %1147 = vmatprep.mubr.msk.bf16.mxu0 %vm334_vm1, %v1204_v5  ;;  %v1212_v9 = vld [vmem:[%s1279_s26 + $0x40] sm:$0xff]   ;;  %v1213_v10 = vld [vmem:[%s1279_s26 + $0x48] sm:$0xff]   ;;  %v1214_v11 = vld [vmem:[%s1279_s26 + $0x50] sm:$0xff]   ;;  %s184_s8 = scalar_lea.vmem %s1440_s3, %s917_s5 }
  0x10   : > { %1163 = vmatprep.mubr.msk.bf16.mxu1 %vm334_vm1, %v1212_v9  ;;  %v1207_v12 = vld [vmem:[%s1279_s26 + $0x18] sm:$0xff]   ;;  %v1208_v14 = vld [vmem:[%s1279_s26 + $0x20] sm:$0xff]   ;;  %v1209_v16 = vld [vmem:[%s1279_s26 + $0x28] sm:$0xff]  }
  0x11   : > { %1140 = vmatpush3.bf16.msra.mxu0 %v1200_v1  ;;  %1185 = vmatpush3.bf16.msra.mxu1 %v1200_v1  ;;  %v1215_v13 = vld [vmem:[%s1279_s26 + $0x58] sm:$0xff]   ;;  %v1216_v15 = vld [vmem:[%s1279_s26 + $0x60] sm:$0xff]   ;;  %v1217_v17 = vld [vmem:[%s1279_s26 + $0x68] sm:$0xff]  }
  0x12   : > { %1141 = vmatprep.subr.bf16.mxu0 %v1201_v3  ;;  %1181 = vmatprep.subr.bf16.mxu1 %v1201_v3  ;;  %v1210_v18 = vld [vmem:[%s1279_s26 + $0x30] sm:$0xff]   ;;  %v1211_v20 = vld [vmem:[%s1279_s26 + $0x38] sm:$0xff]  }
  0x13   : > { %v1218_v19 = vld [vmem:[%s1279_s26 + $0x70] sm:$0xff]   ;;  %v1219_v21 = vld [vmem:[%s1279_s26 + $0x78] sm:$0xff]  }
  0x15   : > { %1142 = vmatpush3.bf16.msra.mxu0 %v1201_v3  ;;  %1186 = vmatpush3.bf16.msra.mxu1 %v1201_v3 }
  0x16   : > { %1143 = vmatprep.subr.bf16.mxu0 %v1202_v4  ;;  %1182 = vmatprep.subr.bf16.mxu1 %v1202_v4 }
  0x19   : > { %1144 = vmatpush3.bf16.msra.mxu0 %v1202_v4  ;;  %1187 = vmatpush3.bf16.msra.mxu1 %v1202_v4 }
  0x1a   : > { %1145 = vmatprep.subr.bf16.mxu0 %v1203_v6  ;;  %1183 = vmatprep.subr.bf16.mxu1 %v1203_v6 }
  0x1d   : > { %1146 = vmatpush3.bf16.msra.mxu0 %v1203_v6  ;;  %1188 = vmatpush3.bf16.msra.mxu1 %v1203_v6 }
  0x20   : > { %1148 = vmatmul.mubr.msk.bf16.vlgmr.msra.gmra.mxu0 %vm334_vm1, %v1205_v7  ;;  %1164 = vmatmul.mubr.msk.bf16.vlgmr.msra.gmra.mxu1 %vm334_vm1, %v1213_v10 }
  0x21   : > { %1151 = vmatprep.mubr.msk.bf16.mxu0 %vm334_vm1, %v1206_v8  ;;  %1167 = vmatprep.mubr.msk.bf16.mxu1 %vm334_vm1, %v1214_v11 }
  0x28   : > { %1152 = vmatmul.mubr.msk.bf16.gmra.mxu0 %vm334_vm1, %v1207_v12  ;;  %1168 = vmatmul.mubr.msk.bf16.gmra.mxu1 %vm334_vm1, %v1215_v13 }
  0x29   : > { %1155 = vmatprep.mubr.msk.bf16.mxu0 %vm334_vm1, %v1208_v14  ;;  %1171 = vmatprep.mubr.msk.bf16.mxu1 %vm334_vm1, %v1216_v15 }
  0x30   : > { %1156 = vmatmul.mubr.msk.bf16.gmra.mxu0 %vm334_vm1, %v1209_v16  ;;  %1172 = vmatmul.mubr.msk.bf16.gmra.mxu1 %vm334_vm1, %v1217_v17 }
  0x31   : > { %1159 = vmatprep.mubr.msk.bf16.mxu0 %vm334_vm1, %v1210_v18  ;;  %1175 = vmatprep.mubr.msk.bf16.mxu1 %vm334_vm1, %v1218_v19 }
  0x38   : > { %1160 = vmatmul.mubr.msk.bf16.gmra.mxu0 %vm334_vm1, %v1211_v20  ;;  %1176 = vmatmul.mubr.msk.bf16.gmra.mxu1 %vm334_vm1, %v1219_v21 }
  0xe0   : > { %v1149_v22 = vpop.f32.mrf.mxu0  ;;  %v1316_v23 = vpop.f32.mrf.mxu1 }
  0xe1   : > { %v747_v39 = vmul.f32 %v1149_v22, %v1149_v22 }
  0xe2   : > { %v421_v24 = vpop.f32.mrf.mxu0  ;;  %v1318_v25 = vpop.f32.mrf.mxu1 }
  0xe3   : > { %v745_v30 = vmul.f32 %v421_v24, %v421_v24 }
  0xe4   : > { %v1150_v26 = vpop.f32.mrf.mxu0  ;;  %v1327_v27 = vpop.f32.mrf.mxu1 }
  0xe5   : > { %v1029_v28 = vpack.c.bf16 %v1150_v26, %v1149_v22  ;;  %v1069_v29 = vpack.c.bf16 %v1327_v27, %v1316_v23  ;;  %v748_v44 = vmul.f32 %v1150_v26, %v1150_v26 }
  0xe6   : > { %v424_v31 = vpop.f32.mrf.mxu0  ;;  %v1331_v32 = vpop.f32.mrf.mxu1 }
  0xe7   : > { %1101 = vst [vmem:[%s1325_s4 + $0x8] sm:$0xff] %v1029_v28   ;;  %v1024_v33 = vpack.c.bf16 %v424_v31, %v421_v24  ;;  %v708_v34 = vadd.f32 %v424_v31, %v421_v24  ;;  %v746_v35 = vmul.f32 %v424_v31, %v424_v31  ;;  %1109 = vst [vmem:[%s1325_s4 + $0x48] sm:$0xff] %v1069_v29  }
  0xe8   : > { %v1064_v36 = vpack.c.bf16 %v1331_v32, %v1318_v25  ;;  %v1153_v37 = vpop.f32.mrf.mxu0  ;;  %v1337_v38 = vpop.f32.mrf.mxu1 }
  0xe9   : > { %1025 = vst [vmem:[%s1325_s4] sm:$0xff] %v1024_v33   ;;  %v709_v40 = vadd.f32 %v1149_v22, %v708_v34  ;;  %v777_v41 = vadd.f32 %v746_v35, %v745_v30  ;;  %v751_v63 = vmul.f32 %v1153_v37, %v1153_v37 }
  0xea   : > { %1108 = vst [vmem:[%s1325_s4 + $0x40] sm:$0xff] %v1064_v36   ;;  %v437_v42 = vpop.f32.mrf.mxu0  ;;  %v1341_v43 = vpop.f32.mrf.mxu1 }
  0xeb   : > { %v778_v45 = vadd.f32 %v777_v41, %v747_v39  ;;  %v710_v46 = vadd.f32 %v1150_v26, %v709_v40  ;;  %v749_v50 = vmul.f32 %v437_v42, %v437_v42 }
  0xec   : > { %v1154_v47 = vpop.f32.mrf.mxu0  ;;  %v1343_v48 = vpop.f32.mrf.mxu1 }
  0xed   : > { %v711_v49 = vadd.f32 %v710_v46, %v437_v42  ;;  %v779_v51 = vadd.f32 %v778_v45, %v748_v44  ;;  %v1039_v52 = vpack.c.bf16 %v1154_v47, %v1153_v37  ;;  %v1079_v54 = vpack.c.bf16 %v1343_v48, %v1337_v38 }
  0xee   : > { %v440_v53 = vpop.f32.mrf.mxu0  ;;  %v1347_v55 = vpop.f32.mrf.mxu1  ;;  %v752_v4 = vmul.f32 %v1154_v47, %v1154_v47 }
  0xef   : > { %v780_v56 = vadd.f32 %v779_v51, %v749_v50  ;;  %1103 = vst [vmem:[%s1325_s4 + $0x18] sm:$0xff] %v1039_v52   ;;  %v1034_v57 = vpack.c.bf16 %v440_v53, %v437_v42  ;;  %v712_v58 = vadd.f32 %v711_v49, %v440_v53  ;;  %v750_v59 = vmul.f32 %v440_v53, %v440_v53 }
  0xf0   : > { %v1157_v60 = vpop.f32.mrf.mxu0  ;;  %1111 = vst [vmem:[%s1325_s4 + $0x58] sm:$0xff] %v1079_v54   ;;  %v1074_v61 = vpack.c.bf16 %v1347_v55, %v1341_v43  ;;  %v1353_v62 = vpop.f32.mrf.mxu1 }
  0xf1   : > { %1102 = vst [vmem:[%s1325_s4 + $0x10] sm:$0xff] %v1034_v57   ;;  %v713_v0 = vadd.f32 %v1153_v37, %v712_v58  ;;  %v781_v1 = vadd.f32 %v780_v56, %v750_v59  ;;  %v755_v24 = vmul.f32 %v1157_v60, %v1157_v60  ;;  %v761_v59 = vmul.f32 %v1318_v25, %v1318_v25 }
  0xf2   : > { %v453_v2 = vpop.f32.mrf.mxu0  ;;  %1110 = vst [vmem:[%s1325_s4 + $0x50] sm:$0xff] %v1074_v61   ;;  %v1357_v3 = vpop.f32.mrf.mxu1 }
  0xf3   : > { %v782_v5 = vadd.f32 %v781_v1, %v751_v63  ;;  %v714_v6 = vadd.f32 %v1154_v47, %v713_v0  ;;  %v753_v10 = vmul.f32 %v453_v2, %v453_v2  ;;  %v762_v0 = vmul.f32 %v1331_v32, %v1331_v32 }
  0xf4   : > { %v1158_v7 = vpop.f32.mrf.mxu0  ;;  %v1359_v8 = vpop.f32.mrf.mxu1 }
  0xf5   : > { %v715_v9 = vadd.f32 %v714_v6, %v453_v2  ;;  %v783_v11 = vadd.f32 %v782_v5, %v752_v4  ;;  %v1049_v12 = vpack.c.bf16 %v1158_v7, %v1157_v60  ;;  %v1089_v14 = vpack.c.bf16 %v1359_v8, %v1353_v62 }
  0xf6   : > { %v456_v13 = vpop.f32.mrf.mxu0  ;;  %v1363_v15 = vpop.f32.mrf.mxu1  ;;  %v756_v31 = vmul.f32 %v1158_v7, %v1158_v7  ;;  %v764_v6 = vmul.f32 %v1327_v27, %v1327_v27 }
  0xf7   : > { %v784_v16 = vadd.f32 %v783_v11, %v753_v10  ;;  %1105 = vst [vmem:[%s1325_s4 + $0x28] sm:$0xff] %v1049_v12   ;;  %v1044_v17 = vpack.c.bf16 %v456_v13, %v453_v2  ;;  %v716_v18 = vadd.f32 %v715_v9, %v456_v13  ;;  %v754_v19 = vmul.f32 %v456_v13, %v456_v13 }
  0xf8   : > { %v1161_v20 = vpop.f32.mrf.mxu0  ;;  %1113 = vst [vmem:[%s1325_s4 + $0x68] sm:$0xff] %v1089_v14   ;;  %v1084_v21 = vpack.c.bf16 %v1363_v15, %v1357_v3  ;;  %v1369_v22 = vpop.f32.mrf.mxu1  ;;  %v763_v2 = vmul.f32 %v1316_v23, %v1316_v23  ;;  %v765_v10 = vmul.f32 %v1341_v43, %v1341_v43  ;;  %v766_v13 = vmul.f32 %v1347_v55, %v1347_v55 }
  0xf9   : > { %1104 = vst [vmem:[%s1325_s4 + $0x20] sm:$0xff] %v1044_v17   ;;  %v717_v26 = vadd.f32 %v1157_v60, %v716_v18  ;;  %v785_v28 = vadd.f32 %v784_v16, %v754_v19  ;;  %v759_v52 = vmul.f32 %v1161_v20, %v1161_v20  ;;  %v769_v19 = vmul.f32 %v1357_v3, %v1357_v3 }
  0xfa   : > { %v469_v29 = vpop.f32.mrf.mxu0  ;;  %1112 = vst [vmem:[%s1325_s4 + $0x60] sm:$0xff] %v1084_v21   ;;  %v1373_v30 = vpop.f32.mrf.mxu1 }
  0xfb   : > { %v786_v33 = vadd.f32 %v785_v28, %v755_v24  ;;  %v718_v34 = vadd.f32 %v1158_v7, %v717_v26  ;;  %v757_v39 = vmul.f32 %v469_v29, %v469_v29  ;;  %v770_v24 = vmul.f32 %v1363_v15, %v1363_v15 }
  0xfc   : > { %v1162_v35 = vpop.f32.mrf.mxu0  ;;  %v1375_v36 = vpop.f32.mrf.mxu1 }
  0xfd   : > { %v719_v37 = vadd.f32 %v718_v34, %v469_v29  ;;  %v787_v40 = vadd.f32 %v786_v33, %v756_v31  ;;  %v1059_v41 = vpack.c.bf16 %v1162_v35, %v1161_v20  ;;  %v1099_v44 = vpack.c.bf16 %v1375_v36, %v1369_v22 }
  0xfe   : > { %v472_v42 = vpop.f32.mrf.mxu0  ;;  %v536_v45 = vpop.f32.mrf.mxu1  ;;  %v760_v56 = vmul.f32 %v1162_v35, %v1162_v35  ;;  %v773_v33 = vmul.f32 %v1373_v30, %v1373_v30 }
  0xff   : > { %v788_v46 = vadd.f32 %v787_v40, %v757_v39  ;;  %1107 = vst [vmem:[%s1325_s4 + $0x38] sm:$0xff] %v1059_v41   ;;  %v1054_v47 = vpack.c.bf16 %v472_v42, %v469_v29  ;;  %v720_v49 = vadd.f32 %v719_v37, %v472_v42  ;;  %v758_v50 = vmul.f32 %v472_v42, %v472_v42 }
 0x100   : > { %1115 = vst [vmem:[%s1325_s4 + $0x78] sm:$0xff] %v1099_v44   ;;  %v1094_v51 = vpack.c.bf16 %v536_v45, %v1373_v30  ;;  %v774_v37 = vmul.f32 %v536_v45, %v536_v45  ;;  %v776_v41 = vmul.f32 %v1375_v36, %v1375_v36 }
 0x101   : > { %1106 = vst [vmem:[%s1325_s4 + $0x30] sm:$0xff] %v1054_v47   ;;  %v721_v53 = vadd.f32 %v1161_v20, %v720_v49  ;;  %v789_v54 = vadd.f32 %v788_v46, %v758_v50  ;;  %v814_v49 = vlaneseq }
 0x102   : > { %1114 = vst [vmem:[%s1325_s4 + $0x70] sm:$0xff] %v1094_v51  }
 0x103   : > { %v722_v57 = vadd.f32 %v1162_v35, %v721_v53  ;;  %v790_v58 = vadd.f32 %v789_v54, %v759_v52  ;;  %v815_v53 = vshrl.u32 %v814_v49, 7 }
 0x105   : > { %v791_v60 = vadd.f32 %v790_v58, %v760_v56  ;;  %v723_v61 = vadd.f32 %v722_v57, %v1318_v25  ;;  %vm817_vm2 = vcmp.eq.s32.totalorder %v815_v53, 1  ;;  %vm816_vm3 = vcmp.eq.s32.totalorder %v815_v53, 0 }
 0x107   : > { %v724_v63 = vadd.f32 %v723_v61, %v1331_v32  ;;  %v792_v1 = vadd.f32 %v791_v60, %v761_v59 }
 0x109   : > { %v725_v4 = vadd.f32 %v1316_v23, %v724_v63  ;;  %v793_v5 = vadd.f32 %v792_v1, %v762_v0  ;;  %v767_v23 = vmul.f32 %v1337_v38, %v1337_v38 }
 0x10b   : > { %v794_v7 = vadd.f32 %v793_v5, %v763_v2  ;;  %v726_v9 = vadd.f32 %v1327_v27, %v725_v4  ;;  %v768_v27 = vmul.f32 %v1343_v48, %v1343_v48 }
 0x10d   : > { %v727_v25 = vadd.f32 %v726_v9, %v1341_v43  ;;  %v795_v11 = vadd.f32 %v794_v7, %v764_v6 }
 0x10f   : > { %v796_v32 = vadd.f32 %v795_v11, %v765_v10  ;;  %v728_v12 = vadd.f32 %v727_v25, %v1347_v55 }
 0x111   : > { %v729_v14 = vadd.f32 %v1337_v38, %v728_v12  ;;  %v797_v16 = vadd.f32 %v796_v32, %v766_v13  ;;  %v771_v38 = vmul.f32 %v1353_v62, %v1353_v62 }
 0x113   : > { %v798_v17 = vadd.f32 %v797_v16, %v767_v23  ;;  %v730_v18 = vadd.f32 %v1343_v48, %v729_v14  ;;  %v772_v48 = vmul.f32 %v1359_v8, %v1359_v8 }
 0x115   : > { %v731_v43 = vadd.f32 %v730_v18, %v1357_v3  ;;  %v799_v20 = vadd.f32 %v798_v17, %v768_v27 }
 0x117   : > { %v800_v21 = vadd.f32 %v799_v20, %v769_v19  ;;  %v732_v55 = vadd.f32 %v731_v43, %v1363_v15 }
 0x119   : > { %v733_v26 = vadd.f32 %v1353_v62, %v732_v55  ;;  %v801_v28 = vadd.f32 %v800_v21, %v770_v24  ;;  %v775_v62 = vmul.f32 %v1369_v22, %v1369_v22 }
 0x11b   : > { %v802_v29 = vadd.f32 %v801_v28, %v771_v38  ;;  %v734_v3 = vadd.f32 %v1359_v8, %v733_v26 }
 0x11d   : > { %v735_v31 = vadd.f32 %v734_v3, %v1373_v30  ;;  %v803_v34 = vadd.f32 %v802_v29, %v772_v48 }
 0x11f   : > { %v804_v15 = vadd.f32 %v803_v34, %v773_v33  ;;  %v736_v35 = vadd.f32 %v735_v31, %v536_v45 }
 0x121   : > { %v737_v39 = vadd.f32 %v1369_v22, %v736_v35  ;;  %v805_v40 = vadd.f32 %v804_v15, %v774_v37 }
 0x123   : > { %v738_v8 = vadd.f32 %v1375_v36, %v737_v39  ;;  %v806_v42 = vadd.f32 %v805_v40, %v775_v62 }
 0x125   : > { %v739_v44 = vrot.slane %v738_v8, 4  ;;  %v807_v46 = vadd.f32 %v806_v42, %v776_v41 }
 0x127   : > { %v740_v30 = vadd.f32 %v739_v44, %v738_v8  ;;  %v808_v47 = vrot.slane %v807_v46, 4 }
 0x129   : > { %v741_v50 = vrot.slane %v740_v30, 2  ;;  %v809_v45 = vadd.f32 %v808_v47, %v807_v46 }
 0x12b   : > { %v742_v51 = vadd.f32 %v741_v50, %v740_v30  ;;  %v810_v52 = vrot.slane %v809_v45, 2 }
 0x12d   : > { %v811_v22 = vadd.f32 %v810_v52, %v809_v45  ;;  %v743_v54 = vrot.slane %v742_v51, 1 }
 0x12f   : > { %v812_v56 = vrot.slane %v811_v22, 1  ;;  %v744_v36 = vadd.f32 %v743_v54, %v742_v51 }
 0x131   : > { %v813_v57 = vadd.f32 %v812_v56, %v811_v22 }
 0x133   : > { %v818_v58 = vsel %vm817_vm2, %v813_v57, 0.0 }
 0x134   : > { %v819_v59 = vsel %vm816_vm3, %v744_v36, %v818_v58 }
 0x135   : > { %820 = vst [vmem:[%s184_s8] sm:$0xff] %v819_v59 }
 0x136 PF: > { %s14_s12 = sadd.s32 1, %s1226_s12  }
 0x137   : > { %p11_p5 = scmp.ge.s32.totalorder %s14_s12, 4  }
 0x139   :  { %13 = sbr.rel (!%p11_p5) target bundleno = 1 (0x1), region = 70 }

// kernel: up_block.3
= control target key start
LH: loop header
LB: loop body
LE: loop exit
PB: predicated region body
PF: predicated region fallthrough
CT: control target
= control target key end

     0   :  { %s1218_s12 = smov 0   ;;  %s1383_s0 = inlined_call_operand.vmem [shape: bf16[512,36], index: 0, kind: input, shape index: {}]   ;;  %s1384_s1 = inlined_call_operand.vmem [shape: bf16[36,128], index: 1, kind: input, shape index: {}]   ;;  %s1385_s2 = inlined_call_operand.vmem [shape: bf16[512,128], index: 2, kind: output, shape index: {0}]   ;;  %s1386_s3 = inlined_call_operand.vmem [shape: f32[2,8,128], index: 3, kind: output, shape index: {1}]  }
   0x1 LB: > { %s1224_s13 = sadd.s32 4294967295, %s1196_s12   ;;  %p896_p0 = scmp.ge.s32.totalorder %s1196_s12, 1  ;;  %s1196_s12 = sphi %s1218_s12, %s14_s12  }
   0x2   : > { %p141_p1 = scmp.lt.s32.totalorder %s1196_s12, 3 }
   0x4   : > { %p142_p2 = pnand %p896_p0, %p141_p1 }
   0x5   : > { %s897_s18 = sshll.u32 (!%p142_p2), %s1224_s13, 5  ;;  %p181_p4 = scmp.lt.s32.totalorder (!%p142_p2), %s1224_s13, 1 }
   0x6   : > { %145 = sbr.rel (%p142_p2) target bundleno = 302 (0x12e), region = 28  ;;  %p170_p3 = scmp.lt.s32.totalorder (!%p142_p2), %s897_s18, 63 }
   0xb   : > { %v1171_v0 = vld [vmem:[%s1384_s1 + $0x10] ss:$0 sps:$4 sm:$0x33]   ;;  %vm367_vm0 = vcmask 1041408   ;;  %v1172_v1 = vld [vmem:[%s1384_s1 + $0x8] sm:$0xff]   ;;  %v1173_v3 = vld [vmem:[%s1384_s1] sm:$0xff]  }
   0xc   : > { %1161 = vmatprep.subr.msk.bf16.mxu0 %vm367_vm0, %v1171_v0  ;;  %v369_v2 = vsel %vm367_vm0, %v1171_v0, 0  ;;  %1162 = vmatprep.subr.msk.bf16.mxu1 %vm367_vm0, %v1171_v0  ;;  %s1388_s18 = smov (!%p170_p3, %s897_s18), 63  ;;  %vm318_vm1 = vcmask 293888   ;;  %s1390_s13 = smov (!%p181_p4, %s1224_s13), 1 }
   0xd   : > { %1118 = vmatpush3.bf16.msra.mxu0 %v369_v2  ;;  %1158 = vmatpush3.bf16.msra.mxu1 %v369_v2  ;;  %s898_s21 = sshll.u32 %s1388_s18, 2  ;;  %s901_s28 = sshll.u32 %s1390_s13, 3 }
   0xe   : > { %1119 = vmatprep.subr.bf16.mxu0 %v1172_v1  ;;  %1156 = vmatprep.subr.bf16.mxu1 %v1172_v1  ;;  %s1246_s24 = scalar_lea.vmem %s1383_s0, %s898_s21  ;;  %s1285_s27 = scalar_lea.vmem %s1385_s2, %s898_s21 }
   0xf   : > { %v1174_v4 = vld [vmem:[%s1246_s24] sm:$0xff]   ;;  %v1175_v5 = vld [vmem:[%s1246_s24 + $0x8] sm:$0xff]   ;;  %v1176_v6 = vld [vmem:[%s1246_s24 + $0x10] sm:$0xff]   ;;  %s184_s4 = scalar_lea.vmem %s1386_s3, %s901_s28 }
  0x10   : > { %1123 = vmatprep.mubr.msk.bf16.mxu0 %vm318_vm1, %v1174_v4  ;;  %v1177_v7 = vld [vmem:[%s1246_s24 + $0x18] sm:$0xff]   ;;  %v1178_v8 = vld [vmem:[%s1246_s24 + $0x20] sm:$0xff]   ;;  %v1183_v10 = vld [vmem:[%s1246_s24 + $0x48] sm:$0xff]  }
  0x11   : > { %1120 = vmatpush3.bf16.msra.mxu0 %v1172_v1  ;;  %1159 = vmatpush3.bf16.msra.mxu1 %v1172_v1  ;;  %v1182_v9 = vld [vmem:[%s1246_s24 + $0x40] sm:$0xff]   ;;  %v1184_v11 = vld [vmem:[%s1246_s24 + $0x50] sm:$0xff]   ;;  %v1185_v12 = vld [vmem:[%s1246_s24 + $0x58] sm:$0xff]  }
  0x12   : > { %1121 = vmatprep.subr.bf16.mxu0 %v1173_v3  ;;  %1157 = vmatprep.subr.bf16.mxu1 %v1173_v3  ;;  %v1186_v13 = vld [vmem:[%s1246_s24 + $0x60] sm:$0xff]   ;;  %v1179_v14 = vld [vmem:[%s1246_s24 + $0x28] sm:$0xff]   ;;  %v1180_v15 = vld [vmem:[%s1246_s24 + $0x30] sm:$0xff]  }
  0x13   : > { %1139 = vmatprep.mubr.msk.bf16.mxu1 %vm318_vm1, %v1182_v9  ;;  %v1187_v16 = vld [vmem:[%s1246_s24 + $0x68] sm:$0xff]   ;;  %v1188_v17 = vld [vmem:[%s1246_s24 + $0x70] sm:$0xff]   ;;  %v1181_v18 = vld [vmem:[%s1246_s24 + $0x38] sm:$0xff]  }
  0x14   : > { %v1189_v19 = vld [vmem:[%s1246_s24 + $0x78] sm:$0xff]  }
  0x15   : > { %1122 = vmatpush3.bf16.msra.mxu0 %v1173_v3  ;;  %1160 = vmatpush3.bf16.msra.mxu1 %v1173_v3 }
  0x18   : > { %1124 = vmatmul.mubr.msk.bf16.vlgmr.msra.gmra.mxu0 %vm318_vm1, %v1175_v5  ;;  %1140 = vmatmul.mubr.msk.bf16.vlgmr.msra.gmra.mxu1 %vm318_vm1, %v1183_v10 }
  0x19   : > { %1127 = vmatprep.mubr.msk.bf16.mxu0 %vm318_vm1, %v1176_v6  ;;  %1143 = vmatprep.mubr.msk.bf16.mxu1 %vm318_vm1, %v1184_v11 }
  0x20   : > { %1128 = vmatmul.mubr.msk.bf16.gmra.mxu0 %vm318_vm1, %v1177_v7  ;;  %1144 = vmatmul.mubr.msk.bf16.gmra.mxu1 %vm318_vm1, %v1185_v12 }
  0x21   : > { %1131 = vmatprep.mubr.msk.bf16.mxu0 %vm318_vm1, %v1178_v8  ;;  %1147 = vmatprep.mubr.msk.bf16.mxu1 %vm318_vm1, %v1186_v13 }
  0x28   : > { %1132 = vmatmul.mubr.msk.bf16.gmra.mxu0 %vm318_vm1, %v1179_v14  ;;  %1148 = vmatmul.mubr.msk.bf16.gmra.mxu1 %vm318_vm1, %v1187_v16 }
  0x29   : > { %1135 = vmatprep.mubr.msk.bf16.mxu0 %vm318_vm1, %v1180_v15  ;;  %1151 = vmatprep.mubr.msk.bf16.mxu1 %vm318_vm1, %v1188_v17 }
  0x30   : > { %1136 = vmatmul.mubr.msk.bf16.gmra.mxu0 %vm318_vm1, %v1181_v18  ;;  %1152 = vmatmul.mubr.msk.bf16.gmra.mxu1 %vm318_vm1, %v1189_v19 }
  0xd8   : > { %v1125_v20 = vpop.f32.mrf.mxu0  ;;  %v1287_v25 = vpop.f32.mrf.mxu1 }
  0xd9   : > { %v731_v32 = vmul.f32 %v1125_v20, %v1125_v20 }
  0xda   : > { %v405_v21 = vpop.f32.mrf.mxu0  ;;  %v1290_v31 = vpop.f32.mrf.mxu1 }
  0xdb   : > { %v729_v26 = vmul.f32 %v405_v21, %v405_v21 }
  0xdc   : > { %v1126_v22 = vpop.f32.mrf.mxu0  ;;  %v1293_v36 = vpop.f32.mrf.mxu1 }
  0xdd   : > { %v1011_v23 = vpack.c.bf16 %v1126_v22, %v1125_v20  ;;  %v732_v37 = vmul.f32 %v1126_v22, %v1126_v22  ;;  %v1051_v40 = vpack.c.bf16 %v1293_v36, %v1287_v25 }
  0xde   : > { %v408_v24 = vpop.f32.mrf.mxu0  ;;  %v1297_v42 = vpop.f32.mrf.mxu1 }
  0xdf   : > { %1083 = vst [vmem:[%s1285_s27 + $0x8] sm:$0xff] %v1011_v23   ;;  %v1006_v27 = vpack.c.bf16 %v408_v24, %v405_v21  ;;  %v692_v28 = vadd.f32 %v408_v24, %v405_v21  ;;  %v730_v29 = vmul.f32 %v408_v24, %v408_v24  ;;  %1091 = vst [vmem:[%s1285_s27 + $0x48] sm:$0xff] %v1051_v40  }
  0xe0   : > { %v1129_v30 = vpop.f32.mrf.mxu0  ;;  %v1046_v48 = vpack.c.bf16 %v1297_v42, %v1290_v31  ;;  %v1302_v49 = vpop.f32.mrf.mxu1 }
  0xe1   : > { %1007 = vst [vmem:[%s1285_s27] sm:$0xff] %v1006_v27   ;;  %v693_v33 = vadd.f32 %v1125_v20, %v692_v28  ;;  %v761_v34 = vadd.f32 %v730_v29, %v729_v26  ;;  %v735_v56 = vmul.f32 %v1129_v30, %v1129_v30 }
  0xe2   : > { %v421_v35 = vpop.f32.mrf.mxu0  ;;  %1090 = vst [vmem:[%s1285_s27 + $0x40] sm:$0xff] %v1046_v48   ;;  %v1306_v55 = vpop.f32.mrf.mxu1 }
  0xe3   : > { %v762_v38 = vadd.f32 %v761_v34, %v731_v32  ;;  %v694_v39 = vadd.f32 %v1126_v22, %v693_v33  ;;  %v733_v44 = vmul.f32 %v421_v35, %v421_v35 }
  0xe4   : > { %v1130_v41 = vpop.f32.mrf.mxu0  ;;  %v1309_v60 = vpop.f32.mrf.mxu1 }
  0xe5   : > { %v695_v43 = vadd.f32 %v694_v39, %v421_v35  ;;  %v763_v45 = vadd.f32 %v762_v38, %v732_v37  ;;  %v1021_v46 = vpack.c.bf16 %v1130_v41, %v1129_v30  ;;  %v736_v61 = vmul.f32 %v1130_v41, %v1130_v41 }
  0xe6   : > { %v424_v47 = vpop.f32.mrf.mxu0  ;;  %v1061_v0 = vpack.c.bf16 %v1309_v60, %v1302_v49  ;;  %v1313_v2 = vpop.f32.mrf.mxu1 }
  0xe7   : > { %v764_v50 = vadd.f32 %v763_v45, %v733_v44  ;;  %1085 = vst [vmem:[%s1285_s27 + $0x18] sm:$0xff] %v1021_v46   ;;  %v1016_v51 = vpack.c.bf16 %v424_v47, %v421_v35  ;;  %v696_v52 = vadd.f32 %v695_v43, %v424_v47  ;;  %v734_v53 = vmul.f32 %v424_v47, %v424_v47 }
  0xe8   : > { %v1133_v54 = vpop.f32.mrf.mxu0  ;;  %1093 = vst [vmem:[%s1285_s27 + $0x58] sm:$0xff] %v1061_v0   ;;  %v1056_v8 = vpack.c.bf16 %v1313_v2, %v1306_v55  ;;  %v1318_v9 = vpop.f32.mrf.mxu1 }
  0xe9   : > { %1084 = vst [vmem:[%s1285_s27 + $0x10] sm:$0xff] %v1016_v51   ;;  %v697_v57 = vadd.f32 %v1129_v30, %v696_v52  ;;  %v765_v58 = vadd.f32 %v764_v50, %v734_v53  ;;  %v739_v16 = vmul.f32 %v1133_v54, %v1133_v54  ;;  %v745_v53 = vmul.f32 %v1290_v31, %v1290_v31 }
  0xea   : > { %v437_v59 = vpop.f32.mrf.mxu0  ;;  %1092 = vst [vmem:[%s1285_s27 + $0x50] sm:$0xff] %v1056_v8   ;;  %v1322_v15 = vpop.f32.mrf.mxu1  ;;  %v750_v8 = vmul.f32 %v1313_v2, %v1313_v2 }
  0xeb   : > { %v766_v62 = vadd.f32 %v765_v58, %v735_v56  ;;  %v698_v63 = vadd.f32 %v1130_v41, %v697_v57  ;;  %v737_v4 = vmul.f32 %v437_v59, %v437_v59 }
  0xec   : > { %v1134_v1 = vpop.f32.mrf.mxu0  ;;  %v1325_v20 = vpop.f32.mrf.mxu1 }
  0xed   : > { %v699_v3 = vadd.f32 %v698_v63, %v437_v59  ;;  %v767_v5 = vadd.f32 %v766_v62, %v736_v61  ;;  %v1031_v6 = vpack.c.bf16 %v1134_v1, %v1133_v54  ;;  %v740_v21 = vmul.f32 %v1134_v1, %v1134_v1 }
  0xee   : > { %v440_v7 = vpop.f32.mrf.mxu0  ;;  %v1071_v24 = vpack.c.bf16 %v1325_v20, %v1318_v9  ;;  %v504_v27 = vpop.f32.mrf.mxu1  ;;  %v747_v62 = vmul.f32 %v1287_v25, %v1287_v25 }
  0xef   : > { %v768_v10 = vadd.f32 %v767_v5, %v737_v4  ;;  %1087 = vst [vmem:[%s1285_s27 + $0x28] sm:$0xff] %v1031_v6   ;;  %v1026_v11 = vpack.c.bf16 %v440_v7, %v437_v59  ;;  %v700_v12 = vadd.f32 %v699_v3, %v440_v7  ;;  %v738_v13 = vmul.f32 %v440_v7, %v440_v7 }
  0xf0   : > { %v1137_v14 = vpop.f32.mrf.mxu0  ;;  %1095 = vst [vmem:[%s1285_s27 + $0x68] sm:$0xff] %v1071_v24   ;;  %v1066_v34 = vpack.c.bf16 %v504_v27, %v1322_v15  ;;  %v1331_v35 = vpop.f32.mrf.mxu1  ;;  %v746_v59 = vmul.f32 %v1297_v42, %v1297_v42  ;;  %v749_v5 = vmul.f32 %v1306_v55, %v1306_v55 }
  0xf1   : > { %1086 = vst [vmem:[%s1285_s27 + $0x20] sm:$0xff] %v1026_v11   ;;  %v701_v17 = vadd.f32 %v1133_v54, %v700_v12  ;;  %v769_v18 = vadd.f32 %v768_v10, %v738_v13  ;;  %v743_v43 = vmul.f32 %v1137_v14, %v1137_v14 }
  0xf2   : > { %v453_v19 = vpop.f32.mrf.mxu0  ;;  %1094 = vst [vmem:[%s1285_s27 + $0x60] sm:$0xff] %v1066_v34   ;;  %v517_v41 = vpop.f32.mrf.mxu1 }
  0xf3   : > { %v770_v22 = vadd.f32 %v769_v18, %v739_v16  ;;  %v702_v23 = vadd.f32 %v1134_v1, %v701_v17  ;;  %v741_v29 = vmul.f32 %v453_v19, %v453_v19  ;;  %v748_v1 = vmul.f32 %v1293_v36, %v1293_v36 }
  0xf4   : > { %v1138_v26 = vpop.f32.mrf.mxu0  ;;  %v1154_v46 = vpop.f32.mrf.mxu1  ;;  %v754_v18 = vmul.f32 %v504_v27, %v504_v27 }
  0xf5   : > { %v703_v28 = vadd.f32 %v702_v23, %v453_v19  ;;  %v771_v30 = vadd.f32 %v770_v22, %v740_v21  ;;  %v1041_v32 = vpack.c.bf16 %v1138_v26, %v1137_v14  ;;  %v744_v47 = vmul.f32 %v1138_v26, %v1138_v26 }
  0xf6   : > { %v456_v33 = vpop.f32.mrf.mxu0  ;;  %v1081_v51 = vpack.c.bf16 %v1154_v46, %v1331_v35  ;;  %v520_v52 = vpop.f32.mrf.mxu1  ;;  %v756_v22 = vmul.f32 %v1325_v20, %v1325_v20 }
  0xf7   : > { %v772_v37 = vadd.f32 %v771_v30, %v741_v29  ;;  %1089 = vst [vmem:[%s1285_s27 + $0x38] sm:$0xff] %v1041_v32   ;;  %v1036_v38 = vpack.c.bf16 %v456_v33, %v453_v19  ;;  %v704_v39 = vadd.f32 %v703_v28, %v456_v33  ;;  %v742_v40 = vmul.f32 %v456_v33, %v456_v33 }
  0xf8   : > { %1097 = vst [vmem:[%s1285_s27 + $0x78] sm:$0xff] %v1081_v51   ;;  %v1076_v57 = vpack.c.bf16 %v520_v52, %v517_v41  ;;  %v755_v19 = vmul.f32 %v1318_v9, %v1318_v9  ;;  %v759_v30 = vmul.f32 %v1331_v35, %v1331_v35  ;;  %v760_v33 = vmul.f32 %v1154_v46, %v1154_v46 }
  0xf9   : > { %1088 = vst [vmem:[%s1285_s27 + $0x30] sm:$0xff] %v1036_v38   ;;  %v705_v44 = vadd.f32 %v1137_v14, %v704_v39  ;;  %v773_v45 = vadd.f32 %v772_v37, %v742_v40  ;;  %v753_v14 = vmul.f32 %v1322_v15, %v1322_v15 }
  0xfa   : > { %1096 = vst [vmem:[%s1285_s27 + $0x70] sm:$0xff] %v1076_v57  }
  0xfb   : > { %v706_v48 = vadd.f32 %v1138_v26, %v705_v44  ;;  %v774_v50 = vadd.f32 %v773_v45, %v743_v43  ;;  %v757_v26 = vmul.f32 %v517_v41, %v517_v41 }
  0xfd   : > { %v775_v54 = vadd.f32 %v774_v50, %v744_v47  ;;  %v707_v56 = vadd.f32 %v706_v48, %v1290_v31 }
  0xff   : > { %v708_v58 = vadd.f32 %v707_v56, %v1297_v42  ;;  %v776_v61 = vadd.f32 %v775_v54, %v745_v53 }
 0x101   : > { %v709_v63 = vadd.f32 %v1287_v25, %v708_v58  ;;  %v777_v0 = vadd.f32 %v776_v61, %v746_v59  ;;  %v751_v25 = vmul.f32 %v1302_v49, %v1302_v49 }
 0x103   : > { %v778_v3 = vadd.f32 %v777_v0, %v747_v62  ;;  %v710_v31 = vadd.f32 %v1293_v36, %v709_v63  ;;  %v752_v36 = vmul.f32 %v1309_v60, %v1309_v60 }
 0x105   : > { %v711_v4 = vadd.f32 %v710_v31, %v1306_v55  ;;  %v779_v42 = vadd.f32 %v778_v3, %v748_v1 }
 0x107   : > { %v780_v6 = vadd.f32 %v779_v42, %v749_v5  ;;  %v712_v7 = vadd.f32 %v711_v4, %v1313_v2 }
 0x109   : > { %v713_v10 = vadd.f32 %v1302_v49, %v712_v7  ;;  %v781_v11 = vadd.f32 %v780_v6, %v750_v8 }
 0x10b   : > { %v782_v12 = vadd.f32 %v781_v11, %v751_v25  ;;  %v714_v13 = vadd.f32 %v1309_v60, %v713_v10 }
 0x10d   : > { %v715_v55 = vadd.f32 %v714_v13, %v1322_v15  ;;  %v783_v16 = vadd.f32 %v782_v12, %v752_v36 }
 0x10f   : > { %v784_v17 = vadd.f32 %v783_v16, %v753_v14  ;;  %v716_v2 = vadd.f32 %v715_v55, %v504_v27  ;;  %v758_v27 = vmul.f32 %v520_v52, %v520_v52 }
 0x111   : > { %v717_v49 = vadd.f32 %v1318_v9, %v716_v2  ;;  %v785_v21 = vadd.f32 %v784_v17, %v754_v18 }
 0x113   : > { %v786_v23 = vadd.f32 %v785_v21, %v755_v19  ;;  %v718_v60 = vadd.f32 %v1325_v20, %v717_v49 }
 0x115   : > { %v719_v24 = vadd.f32 %v718_v60, %v517_v41  ;;  %v787_v15 = vadd.f32 %v786_v23, %v756_v22  ;;  %v798_v41 = vlaneseq }
 0x117   : > { %v788_v28 = vadd.f32 %v787_v15, %v757_v26  ;;  %v720_v29 = vadd.f32 %v719_v24, %v520_v52  ;;  %v799_v48 = vshrl.u32 %v798_v41, 7 }
 0x119   : > { %v721_v9 = vadd.f32 %v1331_v35, %v720_v29  ;;  %v789_v32 = vadd.f32 %v788_v28, %v758_v27  ;;  %vm801_vm2 = vcmp.eq.s32.totalorder %v799_v48, 1  ;;  %vm800_vm3 = vcmp.eq.s32.totalorder %v799_v48, 0 }
 0x11b   : > { %v722_v34 = vadd.f32 %v1154_v46, %v721_v9  ;;  %v790_v37 = vadd.f32 %v789_v32, %v759_v30 }
 0x11d   : > { %v723_v38 = vrot.slane %v722_v34, 4  ;;  %v791_v39 = vadd.f32 %v790_v37, %v760_v33 }
 0x11f   : > { %v724_v20 = vadd.f32 %v723_v38, %v722_v34  ;;  %v792_v40 = vrot.slane %v791_v39, 4 }
 0x121   : > { %v725_v43 = vrot.slane %v724_v20, 2  ;;  %v793_v44 = vadd.f32 %v792_v40, %v791_v39 }
 0x123   : > { %v726_v45 = vadd.f32 %v725_v43, %v724_v20  ;;  %v794_v47 = vrot.slane %v793_v44, 2 }
 0x125   : > { %v795_v50 = vadd.f32 %v794_v47, %v793_v44  ;;  %v727_v51 = vrot.slane %v726_v45, 1 }
 0x127   : > { %v796_v35 = vrot.slane %v795_v50, 1  ;;  %v728_v46 = vadd.f32 %v727_v51, %v726_v45 }
 0x129   : > { %v797_v52 = vadd.f32 %v796_v35, %v795_v50 }
 0x12b   : > { %v802_v53 = vsel %vm801_vm2, %v797_v52, 0.0 }
 0x12c   : > { %v803_v54 = vsel %vm800_vm3, %v728_v46, %v802_v53 }
 0x12d   : > { %804 = vst [vmem:[%s184_s4] sm:$0xff] %v803_v54 }
 0x12e PF: > { %s14_s12 = sadd.s32 1, %s1196_s12  }
 0x12f   : > { %p11_p5 = scmp.ge.s32.totalorder %s14_s12, 4  }
 0x131   :  { %13 = sbr.rel (!%p11_p5) target bundleno = 1 (0x1), region = 70 }

</bundles_post_ra>
